<compile_context>
chip_gen: v5e
topology: v5e:2x2
jax: 0.10.0
libtpu: 0.0.40
codegen_flags: <defaults>
</compile_context>

<pallas_src>
import jax
import jax.numpy as jnp
from jax import lax
from jax.experimental import pallas as pl
from jax.experimental.pallas import tpu as pltpu

LANES = 128  # edges packed per output row (vreg lane width)


# ------------------------------ Pallas kernel -------------------------------

def _edge_inner_product_kernel(src_ref, dst_ref, xt_ref, o_ref):
    """One grid step handles tb*128 edges.

    src_ref/dst_ref: [tb, 128] int32 node indices (lane-dense).
    xt_ref:          [C, N]    x transposed, resident across the whole grid.
    o_ref:           [tb, 128] f32 inner products (lane-dense stores).
    """
    xt = xt_ref[...]                                              # [C, N]
    n = xt.shape[1]
    tb = o_ref.shape[0]
    # Node-id iota along the sublane axis; reused by every one-hot build.
    node_iota = lax.broadcasted_iota(jnp.int32, (n, LANES), 0)    # [N, 128]
    for r in range(tb):                                           # static unroll
        # One-hot selectors for this 128-edge group (exact 0/1 in any dtype).
        oh_s = (node_iota == src_ref[r:r + 1, :]).astype(xt.dtype)   # [N, 128]
        oh_d = (node_iota == dst_ref[r:r + 1, :]).astype(xt.dtype)   # [N, 128]
        # Fused row gather: two small MXU matmuls, f32 accumulation.
        xi = jnp.dot(xt, oh_s, preferred_element_type=jnp.float32)   # [C, 128]
        xj = jnp.dot(xt, oh_d, preferred_element_type=jnp.float32)   # [C, 128]
        # Inner product = sublane reduction of the elementwise product (XLU).
        o_ref[r:r + 1, :] = jnp.sum(xi * xj, axis=0, keepdims=True)  # [1, 128]


def inner_product_decoder_pallas(x_t, src2d, dst2d, *, tb):
    c, n = x_t.shape
    rows_pad = src2d.shape[0]
    grid = (rows_pad // tb,)
    return pl.pallas_call(
        _edge_inner_product_kernel,
        out_shape=jax.ShapeDtypeStruct((rows_pad, LANES), jnp.float32),
        grid_spec=pltpu.PrefetchScalarGridSpec(
            num_scalar_prefetch=0,
            grid=grid,
            in_specs=[
                pl.BlockSpec((tb, LANES), lambda i: (i, 0)),   # src indices
                pl.BlockSpec((tb, LANES), lambda i: (i, 0)),   # dst indices
                pl.BlockSpec((c, n), lambda i: (0, 0)),        # resident x.T
            ],
            out_specs=pl.BlockSpec((tb, LANES), lambda i: (i, 0)),
        ),
        compiler_params=pltpu.CompilerParams(
            dimension_semantics=("parallel",)),    # independent edge blocks
    )(src2d, dst2d, x_t)


# -------------------------------- JAX glue -----------------------------------

def edge_conv_decoder_forward(x, edge_index, *, tb=16):
    """pred[e] = <x[edge_index[0, e]], x[edge_index[1, e]]>  (sigmoid=False)."""
    src = edge_index[0].astype(jnp.int32)
    dst = edge_index[1].astype(jnp.int32)
    e = src.shape[0]

    rows = pl.cdiv(e, LANES)                 # 128-edge rows actually needed
    rows8 = pl.cdiv(rows, 8) * 8
    # Edge tile = tb rows of 128 edges (default 2048 edges/step).  Shrink it for
    # small edge sets so the grid keeps several blocks (v7x splits the parallel
    # axis across 2 TensorCores); always keep tb a multiple of 8.
    tb = max(8, min(tb, rows8 // 8))
    tb = pl.cdiv(tb, 8) * 8
    tb = min(tb, rows8)
    rows_pad = pl.cdiv(rows, tb) * tb
    pad = rows_pad * LANES - e

    # Padding indices point at node 0; the padded predictions are sliced off.
    src2d = jnp.pad(src, (0, pad)).reshape(rows_pad, LANES)
    dst2d = jnp.pad(dst, (0, pad)).reshape(rows_pad, LANES)
    x_t = x.T                                # [C, N], tiny; keep input dtype

    out = inner_product_decoder_pallas(x_t, src2d, dst2d, tb=tb)  # [rows_pad, 128]
    return out.reshape(-1)[:e]               # [E]


# ---------------------------------- main --------------------------------------

if __name__ == "__main__":
    num_nodes = 64
    channels = 16
    num_edges = 200        # -> one 8x128 edge block (1024 slots) at this size

    key = jax.random.PRNGKey(0)
    kx, ke1, ke2 = jax.random.split(key, 3)

    x = jax.random.normal(kx, (num_nodes, channels), jnp.float32)
    src = jax.random.randint(ke1, (num_edges,), 0, num_nodes, dtype=jnp.int32)
    dst = jax.random.randint(ke2, (num_edges,), 0, num_nodes, dtype=jnp.int32)
    edge_index = jnp.stack([src, dst], axis=0)               # [2, E]

    pred = jax.block_until_ready(edge_conv_decoder_forward(x, edge_index))

    # Pure-JAX reference of the PyTorch forward (InnerProductDecoder, no sigmoid).
    ref = jnp.sum(x[src] * x[dst], axis=-1)

    assert pred.shape == (num_edges,)
    assert bool(jnp.allclose(pred, ref, atol=1e-3, rtol=1e-3)), "mismatch vs JAX reference"
    print("KERNEL_OK")
</pallas_src>

<mosaic_0001>
module attributes {stable_mosaic.version = 11 : i64} {
  func.func @_edge_inner_product_kernel(%arg0: i32, %arg1: memref<8x128xi32, #tpu.memory_space<vmem>>, %arg2: memref<8x128xi32, #tpu.memory_space<vmem>>, %arg3: memref<16x64xf32, #tpu.memory_space<vmem>>, %arg4: memref<8x128xf32, #tpu.memory_space<vmem>>) attributes {dimension_semantics = [#tpu.dimension_semantics<parallel>], iteration_bounds = array<i64: 1>, scalar_prefetch = 0 : i64, scratch_operands = 0 : i64, tpu.core_type = #tpu.core_type<tc>, window_params = [{transform_indices = @transform_0, window_bounds = array<i64: 8, 128>}, {transform_indices = @transform_1, window_bounds = array<i64: 8, 128>}, {pipeline_mode = #tpu.pipeline_mode<synchronous>, transform_indices = @transform_2, window_bounds = array<i64: 16, 64>}, {transform_indices = @transform_3, window_bounds = array<i64: 8, 128>}]} {
    %c0 = arith.constant 0 : index
    %c0_0 = arith.constant 0 : index
    %0 = vector.load %arg3[%c0, %c0_0] : memref<16x64xf32, #tpu.memory_space<vmem>>, vector<16x64xf32>
    %1 = tpu.iota {dimensions = array<i32: 0>} : vector<64x128xi32>
    %c0_1 = arith.constant 0 : index
    %c0_2 = arith.constant 0 : index
    %2 = vector.load %arg1[%c0_1, %c0_2] : memref<8x128xi32, #tpu.memory_space<vmem>>, vector<1x128xi32>
    %3 = vector.broadcast %2 : vector<1x128xi32> to vector<64x128xi32>
    %4 = arith.cmpi eq, %1, %3 : vector<64x128xi32>
    %5 = arith.extui %4 : vector<64x128xi1> to vector<64x128xi32>
    %6 = arith.sitofp %5 : vector<64x128xi32> to vector<64x128xf32>
    %c0_3 = arith.constant 0 : index
    %c0_4 = arith.constant 0 : index
    %7 = vector.load %arg2[%c0_3, %c0_4] : memref<8x128xi32, #tpu.memory_space<vmem>>, vector<1x128xi32>
    %8 = vector.broadcast %7 : vector<1x128xi32> to vector<64x128xi32>
    %9 = arith.cmpi eq, %1, %8 : vector<64x128xi32>
    %10 = arith.extui %9 : vector<64x128xi1> to vector<64x128xi32>
    %11 = arith.sitofp %10 : vector<64x128xi32> to vector<64x128xf32>
    %cst = arith.constant dense<0.000000e+00> : vector<16x128xf32>
    %12 = tpu.matmul %0, %6, %cst {dimension_numbers = #tpu.dot_dimension_numbers<[1], [0], [0], [1], [0, 0, 1, 1], [], []>} : vector<16x64xf32>, vector<64x128xf32>, vector<16x128xf32> -> vector<16x128xf32>
    %cst_5 = arith.constant dense<0.000000e+00> : vector<16x128xf32>
    %13 = tpu.matmul %0, %11, %cst_5 {dimension_numbers = #tpu.dot_dimension_numbers<[1], [0], [0], [1], [0, 0, 1, 1], [], []>} : vector<16x64xf32>, vector<64x128xf32>, vector<16x128xf32> -> vector<16x128xf32>
    %14 = arith.mulf %12, %13 : vector<16x128xf32>
    %cst_6 = arith.constant dense<0.000000e+00> : vector<128xf32>
    %15 = vector.multi_reduction <add>, %14, %cst_6 [0] : vector<16x128xf32> to vector<128xf32>
    %16 = vector.shape_cast %15 : vector<128xf32> to vector<1x128xf32>
    %c0_7 = arith.constant 0 : index
    %c0_8 = arith.constant 0 : index
    %17 = vector.load %arg4[%c0_7, %c0_8] : memref<8x128xf32, #tpu.memory_space<vmem>>, vector<1x128xf32>
    tpu.vector_store %arg4[%c0_7, %c0_8], %16 {strides = array<i32>} : memref<8x128xf32, #tpu.memory_space<vmem>>, vector<1x128xf32>,
    %c1 = arith.constant 1 : index
    %c0_9 = arith.constant 0 : index
    %18 = vector.load %arg1[%c1, %c0_9] : memref<8x128xi32, #tpu.memory_space<vmem>>, vector<1x128xi32>
    %19 = vector.broadcast %18 : vector<1x128xi32> to vector<64x128xi32>
    %20 = arith.cmpi eq, %1, %19 : vector<64x128xi32>
    %21 = arith.extui %20 : vector<64x128xi1> to vector<64x128xi32>
    %22 = arith.sitofp %21 : vector<64x128xi32> to vector<64x128xf32>
    %c1_10 = arith.constant 1 : index
    %c0_11 = arith.constant 0 : index
    %23 = vector.load %arg2[%c1_10, %c0_11] : memref<8x128xi32, #tpu.memory_space<vmem>>, vector<1x128xi32>
    %24 = vector.broadcast %23 : vector<1x128xi32> to vector<64x128xi32>
    %25 = arith.cmpi eq, %1, %24 : vector<64x128xi32>
    %26 = arith.extui %25 : vector<64x128xi1> to vector<64x128xi32>
    %27 = arith.sitofp %26 : vector<64x128xi32> to vector<64x128xf32>
    %cst_12 = arith.constant dense<0.000000e+00> : vector<16x128xf32>
    %28 = tpu.matmul %0, %22, %cst_12 {dimension_numbers = #tpu.dot_dimension_numbers<[1], [0], [0], [1], [0, 0, 1, 1], [], []>} : vector<16x64xf32>, vector<64x128xf32>, vector<16x128xf32> -> vector<16x128xf32>
    %cst_13 = arith.constant dense<0.000000e+00> : vector<16x128xf32>
    %29 = tpu.matmul %0, %27, %cst_13 {dimension_numbers = #tpu.dot_dimension_numbers<[1], [0], [0], [1], [0, 0, 1, 1], [], []>} : vector<16x64xf32>, vector<64x128xf32>, vector<16x128xf32> -> vector<16x128xf32>
    %30 = arith.mulf %28, %29 : vector<16x128xf32>
    %cst_14 = arith.constant dense<0.000000e+00> : vector<128xf32>
    %31 = vector.multi_reduction <add>, %30, %cst_14 [0] : vector<16x128xf32> to vector<128xf32>
    %32 = vector.shape_cast %31 : vector<128xf32> to vector<1x128xf32>
    %c1_15 = arith.constant 1 : index
    %c0_16 = arith.constant 0 : index
    %33 = vector.load %arg4[%c1_15, %c0_16] : memref<8x128xf32, #tpu.memory_space<vmem>>, vector<1x128xf32>
    tpu.vector_store %arg4[%c1_15, %c0_16], %32 {strides = array<i32>} : memref<8x128xf32, #tpu.memory_space<vmem>>, vector<1x128xf32>,
    %c2 = arith.constant 2 : index
    %c0_17 = arith.constant 0 : index
    %34 = vector.load %arg1[%c2, %c0_17] : memref<8x128xi32, #tpu.memory_space<vmem>>, vector<1x128xi32>
    %35 = vector.broadcast %34 : vector<1x128xi32> to vector<64x128xi32>
    %36 = arith.cmpi eq, %1, %35 : vector<64x128xi32>
    %37 = arith.extui %36 : vector<64x128xi1> to vector<64x128xi32>
    %38 = arith.sitofp %37 : vector<64x128xi32> to vector<64x128xf32>
    %c2_18 = arith.constant 2 : index
    %c0_19 = arith.constant 0 : index
    %39 = vector.load %arg2[%c2_18, %c0_19] : memref<8x128xi32, #tpu.memory_space<vmem>>, vector<1x128xi32>
    %40 = vector.broadcast %39 : vector<1x128xi32> to vector<64x128xi32>
    %41 = arith.cmpi eq, %1, %40 : vector<64x128xi32>
    %42 = arith.extui %41 : vector<64x128xi1> to vector<64x128xi32>
    %43 = arith.sitofp %42 : vector<64x128xi32> to vector<64x128xf32>
    %cst_20 = arith.constant dense<0.000000e+00> : vector<16x128xf32>
    %44 = tpu.matmul %0, %38, %cst_20 {dimension_numbers = #tpu.dot_dimension_numbers<[1], [0], [0], [1], [0, 0, 1, 1], [], []>} : vector<16x64xf32>, vector<64x128xf32>, vector<16x128xf32> -> vector<16x128xf32>
    %cst_21 = arith.constant dense<0.000000e+00> : vector<16x128xf32>
    %45 = tpu.matmul %0, %43, %cst_21 {dimension_numbers = #tpu.dot_dimension_numbers<[1], [0], [0], [1], [0, 0, 1, 1], [], []>} : vector<16x64xf32>, vector<64x128xf32>, vector<16x128xf32> -> vector<16x128xf32>
    %46 = arith.mulf %44, %45 : vector<16x128xf32>
    %cst_22 = arith.constant dense<0.000000e+00> : vector<128xf32>
    %47 = vector.multi_reduction <add>, %46, %cst_22 [0] : vector<16x128xf32> to vector<128xf32>
    %48 = vector.shape_cast %47 : vector<128xf32> to vector<1x128xf32>
    %c2_23 = arith.constant 2 : index
    %c0_24 = arith.constant 0 : index
    %49 = vector.load %arg4[%c2_23, %c0_24] : memref<8x128xf32, #tpu.memory_space<vmem>>, vector<1x128xf32>
    tpu.vector_store %arg4[%c2_23, %c0_24], %48 {strides = array<i32>} : memref<8x128xf32, #tpu.memory_space<vmem>>, vector<1x128xf32>,
    %c3 = arith.constant 3 : index
    %c0_25 = arith.constant 0 : index
    %50 = vector.load %arg1[%c3, %c0_25] : memref<8x128xi32, #tpu.memory_space<vmem>>, vector<1x128xi32>
    %51 = vector.broadcast %50 : vector<1x128xi32> to vector<64x128xi32>
    %52 = arith.cmpi eq, %1, %51 : vector<64x128xi32>
    %53 = arith.extui %52 : vector<64x128xi1> to vector<64x128xi32>
    %54 = arith.sitofp %53 : vector<64x128xi32> to vector<64x128xf32>
    %c3_26 = arith.constant 3 : index
    %c0_27 = arith.constant 0 : index
    %55 = vector.load %arg2[%c3_26, %c0_27] : memref<8x128xi32, #tpu.memory_space<vmem>>, vector<1x128xi32>
    %56 = vector.broadcast %55 : vector<1x128xi32> to vector<64x128xi32>
    %57 = arith.cmpi eq, %1, %56 : vector<64x128xi32>
    %58 = arith.extui %57 : vector<64x128xi1> to vector<64x128xi32>
    %59 = arith.sitofp %58 : vector<64x128xi32> to vector<64x128xf32>
    %cst_28 = arith.constant dense<0.000000e+00> : vector<16x128xf32>
    %60 = tpu.matmul %0, %54, %cst_28 {dimension_numbers = #tpu.dot_dimension_numbers<[1], [0], [0], [1], [0, 0, 1, 1], [], []>} : vector<16x64xf32>, vector<64x128xf32>, vector<16x128xf32> -> vector<16x128xf32>
    %cst_29 = arith.constant dense<0.000000e+00> : vector<16x128xf32>
    %61 = tpu.matmul %0, %59, %cst_29 {dimension_numbers = #tpu.dot_dimension_numbers<[1], [0], [0], [1], [0, 0, 1, 1], [], []>} : vector<16x64xf32>, vector<64x128xf32>, vector<16x128xf32> -> vector<16x128xf32>
    %62 = arith.mulf %60, %61 : vector<16x128xf32>
    %cst_30 = arith.constant dense<0.000000e+00> : vector<128xf32>
    %63 = vector.multi_reduction <add>, %62, %cst_30 [0] : vector<16x128xf32> to vector<128xf32>
    %64 = vector.shape_cast %63 : vector<128xf32> to vector<1x128xf32>
    %c3_31 = arith.constant 3 : index
    %c0_32 = arith.constant 0 : index
    %65 = vector.load %arg4[%c3_31, %c0_32] : memref<8x128xf32, #tpu.memory_space<vmem>>, vector<1x128xf32>
    tpu.vector_store %arg4[%c3_31, %c0_32], %64 {strides = array<i32>} : memref<8x128xf32, #tpu.memory_space<vmem>>, vector<1x128xf32>,
    %c4 = arith.constant 4 : index
    %c0_33 = arith.constant 0 : index
    %66 = vector.load %arg1[%c4, %c0_33] : memref<8x128xi32, #tpu.memory_space<vmem>>, vector<1x128xi32>
    %67 = vector.broadcast %66 : vector<1x128xi32> to vector<64x128xi32>
    %68 = arith.cmpi eq, %1, %67 : vector<64x128xi32>
    %69 = arith.extui %68 : vector<64x128xi1> to vector<64x128xi32>
    %70 = arith.sitofp %69 : vector<64x128xi32> to vector<64x128xf32>
    %c4_34 = arith.constant 4 : index
    %c0_35 = arith.constant 0 : index
    %71 = vector.load %arg2[%c4_34, %c0_35] : memref<8x128xi32, #tpu.memory_space<vmem>>, vector<1x128xi32>
    %72 = vector.broadcast %71 : vector<1x128xi32> to vector<64x128xi32>
    %73 = arith.cmpi eq, %1, %72 : vector<64x128xi32>
    %74 = arith.extui %73 : vector<64x128xi1> to vector<64x128xi32>
    %75 = arith.sitofp %74 : vector<64x128xi32> to vector<64x128xf32>
    %cst_36 = arith.constant dense<0.000000e+00> : vector<16x128xf32>
    %76 = tpu.matmul %0, %70, %cst_36 {dimension_numbers = #tpu.dot_dimension_numbers<[1], [0], [0], [1], [0, 0, 1, 1], [], []>} : vector<16x64xf32>, vector<64x128xf32>, vector<16x128xf32> -> vector<16x128xf32>
    %cst_37 = arith.constant dense<0.000000e+00> : vector<16x128xf32>
    %77 = tpu.matmul %0, %75, %cst_37 {dimension_numbers = #tpu.dot_dimension_numbers<[1], [0], [0], [1], [0, 0, 1, 1], [], []>} : vector<16x64xf32>, vector<64x128xf32>, vector<16x128xf32> -> vector<16x128xf32>
    %78 = arith.mulf %76, %77 : vector<16x128xf32>
    %cst_38 = arith.constant dense<0.000000e+00> : vector<128xf32>
    %79 = vector.multi_reduction <add>, %78, %cst_38 [0] : vector<16x128xf32> to vector<128xf32>
    %80 = vector.shape_cast %79 : vector<128xf32> to vector<1x128xf32>
    %c4_39 = arith.constant 4 : index
    %c0_40 = arith.constant 0 : index
    %81 = vector.load %arg4[%c4_39, %c0_40] : memref<8x128xf32, #tpu.memory_space<vmem>>, vector<1x128xf32>
    tpu.vector_store %arg4[%c4_39, %c0_40], %80 {strides = array<i32>} : memref<8x128xf32, #tpu.memory_space<vmem>>, vector<1x128xf32>,
    %c5 = arith.constant 5 : index
    %c0_41 = arith.constant 0 : index
    %82 = vector.load %arg1[%c5, %c0_41] : memref<8x128xi32, #tpu.memory_space<vmem>>, vector<1x128xi32>
    %83 = vector.broadcast %82 : vector<1x128xi32> to vector<64x128xi32>
    %84 = arith.cmpi eq, %1, %83 : vector<64x128xi32>
    %85 = arith.extui %84 : vector<64x128xi1> to vector<64x128xi32>
    %86 = arith.sitofp %85 : vector<64x128xi32> to vector<64x128xf32>
    %c5_42 = arith.constant 5 : index
    %c0_43 = arith.constant 0 : index
    %87 = vector.load %arg2[%c5_42, %c0_43] : memref<8x128xi32, #tpu.memory_space<vmem>>, vector<1x128xi32>
    %88 = vector.broadcast %87 : vector<1x128xi32> to vector<64x128xi32>
    %89 = arith.cmpi eq, %1, %88 : vector<64x128xi32>
    %90 = arith.extui %89 : vector<64x128xi1> to vector<64x128xi32>
    %91 = arith.sitofp %90 : vector<64x128xi32> to vector<64x128xf32>
    %cst_44 = arith.constant dense<0.000000e+00> : vector<16x128xf32>
    %92 = tpu.matmul %0, %86, %cst_44 {dimension_numbers = #tpu.dot_dimension_numbers<[1], [0], [0], [1], [0, 0, 1, 1], [], []>} : vector<16x64xf32>, vector<64x128xf32>, vector<16x128xf32> -> vector<16x128xf32>
    %cst_45 = arith.constant dense<0.000000e+00> : vector<16x128xf32>
    %93 = tpu.matmul %0, %91, %cst_45 {dimension_numbers = #tpu.dot_dimension_numbers<[1], [0], [0], [1], [0, 0, 1, 1], [], []>} : vector<16x64xf32>, vector<64x128xf32>, vector<16x128xf32> -> vector<16x128xf32>
    %94 = arith.mulf %92, %93 : vector<16x128xf32>
    %cst_46 = arith.constant dense<0.000000e+00> : vector<128xf32>
    %95 = vector.multi_reduction <add>, %94, %cst_46 [0] : vector<16x128xf32> to vector<128xf32>
    %96 = vector.shape_cast %95 : vector<128xf32> to vector<1x128xf32>
    %c5_47 = arith.constant 5 : index
    %c0_48 = arith.constant 0 : index
    %97 = vector.load %arg4[%c5_47, %c0_48] : memref<8x128xf32, #tpu.memory_space<vmem>>, vector<1x128xf32>
    tpu.vector_store %arg4[%c5_47, %c0_48], %96 {strides = array<i32>} : memref<8x128xf32, #tpu.memory_space<vmem>>, vector<1x128xf32>,
    %c6 = arith.constant 6 : index
    %c0_49 = arith.constant 0 : index
    %98 = vector.load %arg1[%c6, %c0_49] : memref<8x128xi32, #tpu.memory_space<vmem>>, vector<1x128xi32>
    %99 = vector.broadcast %98 : vector<1x128xi32> to vector<64x128xi32>
    %100 = arith.cmpi eq, %1, %99 : vector<64x128xi32>
    %101 = arith.extui %100 : vector<64x128xi1> to vector<64x128xi32>
    %102 = arith.sitofp %101 : vector<64x128xi32> to vector<64x128xf32>
    %c6_50 = arith.constant 6 : index
    %c0_51 = arith.constant 0 : index
    %103 = vector.load %arg2[%c6_50, %c0_51] : memref<8x128xi32, #tpu.memory_space<vmem>>, vector<1x128xi32>
    %104 = vector.broadcast %103 : vector<1x128xi32> to vector<64x128xi32>
    %105 = arith.cmpi eq, %1, %104 : vector<64x128xi32>
    %106 = arith.extui %105 : vector<64x128xi1> to vector<64x128xi32>
    %107 = arith.sitofp %106 : vector<64x128xi32> to vector<64x128xf32>
    %cst_52 = arith.constant dense<0.000000e+00> : vector<16x128xf32>
    %108 = tpu.matmul %0, %102, %cst_52 {dimension_numbers = #tpu.dot_dimension_numbers<[1], [0], [0], [1], [0, 0, 1, 1], [], []>} : vector<16x64xf32>, vector<64x128xf32>, vector<16x128xf32> -> vector<16x128xf32>
    %cst_53 = arith.constant dense<0.000000e+00> : vector<16x128xf32>
    %109 = tpu.matmul %0, %107, %cst_53 {dimension_numbers = #tpu.dot_dimension_numbers<[1], [0], [0], [1], [0, 0, 1, 1], [], []>} : vector<16x64xf32>, vector<64x128xf32>, vector<16x128xf32> -> vector<16x128xf32>
    %110 = arith.mulf %108, %109 : vector<16x128xf32>
    %cst_54 = arith.constant dense<0.000000e+00> : vector<128xf32>
    %111 = vector.multi_reduction <add>, %110, %cst_54 [0] : vector<16x128xf32> to vector<128xf32>
    %112 = vector.shape_cast %111 : vector<128xf32> to vector<1x128xf32>
    %c6_55 = arith.constant 6 : index
    %c0_56 = arith.constant 0 : index
    %113 = vector.load %arg4[%c6_55, %c0_56] : memref<8x128xf32, #tpu.memory_space<vmem>>, vector<1x128xf32>
    tpu.vector_store %arg4[%c6_55, %c0_56], %112 {strides = array<i32>} : memref<8x128xf32, #tpu.memory_space<vmem>>, vector<1x128xf32>,
    %c7 = arith.constant 7 : index
    %c0_57 = arith.constant 0 : index
    %114 = vector.load %arg1[%c7, %c0_57] : memref<8x128xi32, #tpu.memory_space<vmem>>, vector<1x128xi32>
    %115 = vector.broadcast %114 : vector<1x128xi32> to vector<64x128xi32>
    %116 = arith.cmpi eq, %1, %115 : vector<64x128xi32>
    %117 = arith.extui %116 : vector<64x128xi1> to vector<64x128xi32>
    %118 = arith.sitofp %117 : vector<64x128xi32> to vector<64x128xf32>
    %c7_58 = arith.constant 7 : index
    %c0_59 = arith.constant 0 : index
    %119 = vector.load %arg2[%c7_58, %c0_59] : memref<8x128xi32, #tpu.memory_space<vmem>>, vector<1x128xi32>
    %120 = vector.broadcast %119 : vector<1x128xi32> to vector<64x128xi32>
    %121 = arith.cmpi eq, %1, %120 : vector<64x128xi32>
    %122 = arith.extui %121 : vector<64x128xi1> to vector<64x128xi32>
    %123 = arith.sitofp %122 : vector<64x128xi32> to vector<64x128xf32>
    %cst_60 = arith.constant dense<0.000000e+00> : vector<16x128xf32>
    %124 = tpu.matmul %0, %118, %cst_60 {dimension_numbers = #tpu.dot_dimension_numbers<[1], [0], [0], [1], [0, 0, 1, 1], [], []>} : vector<16x64xf32>, vector<64x128xf32>, vector<16x128xf32> -> vector<16x128xf32>
    %cst_61 = arith.constant dense<0.000000e+00> : vector<16x128xf32>
    %125 = tpu.matmul %0, %123, %cst_61 {dimension_numbers = #tpu.dot_dimension_numbers<[1], [0], [0], [1], [0, 0, 1, 1], [], []>} : vector<16x64xf32>, vector<64x128xf32>, vector<16x128xf32> -> vector<16x128xf32>
    %126 = arith.mulf %124, %125 : vector<16x128xf32>
    %cst_62 = arith.constant dense<0.000000e+00> : vector<128xf32>
    %127 = vector.multi_reduction <add>, %126, %cst_62 [0] : vector<16x128xf32> to vector<128xf32>
    %128 = vector.shape_cast %127 : vector<128xf32> to vector<1x128xf32>
    %c7_63 = arith.constant 7 : index
    %c0_64 = arith.constant 0 : index
    %129 = vector.load %arg4[%c7_63, %c0_64] : memref<8x128xf32, #tpu.memory_space<vmem>>, vector<1x128xf32>
    tpu.vector_store %arg4[%c7_63, %c0_64], %128 {strides = array<i32>} : memref<8x128xf32, #tpu.memory_space<vmem>>, vector<1x128xf32>,
    return
  }
  func.func @transform_0(%arg0: i32) -> (i32, i32) {
    %c0_i32 = arith.constant 0 : i32
    %c0_i32_0 = arith.constant 0 : i32
    return %arg0, %c0_i32 : i32, i32
  }
  func.func @transform_1(%arg0: i32) -> (i32, i32) {
    %c0_i32 = arith.constant 0 : i32
    %c0_i32_0 = arith.constant 0 : i32
    return %arg0, %c0_i32 : i32, i32
  }
  func.func @transform_2(%arg0: i32) -> (i32, i32) {
    %c0_i32 = arith.constant 0 : i32
    %c0_i32_0 = arith.constant 0 : i32
    %c0_i32_1 = arith.constant 0 : i32
    return %c0_i32, %c0_i32_0 : i32, i32
  }
  func.func @transform_3(%arg0: i32) -> (i32, i32) {
    %c0_i32 = arith.constant 0 : i32
    %c0_i32_0 = arith.constant 0 : i32
    return %arg0, %c0_i32 : i32, i32
  }
}

</mosaic_0001>

<bundles_post_ra>
// kernel: tpu_custom_call.1
= control target key start
LH: loop header
LB: loop body
LE: loop exit
PB: predicated region body
PF: predicated region fallthrough
CT: control target
= control target key end

     0   :  { %8 = vsyncpa [#allocation3], 0  ;;  %s1917_s0 = inlined_call_operand.hbm [shape: s32[8,128], index: 0, kind: input, shape index: {}]   ;;  %s1918_s1 = inlined_call_operand.hbm [shape: s32[8,128], index: 1, kind: input, shape index: {}]   ;;  %s1919_s2 = inlined_call_operand.hbm [shape: f32[16,64], index: 2, kind: input, shape index: {}]   ;;  %s1920_s3 = inlined_call_operand.hbm [shape: f32[8,128], index: 3, kind: output, shape index: {}]  }
   0x1   :  { %9 = vsyncpa [#allocation6], 0  ;;  %s27_s14 = sshll.u32 %s1918_s1, 4  ;;  %s28_s14 = int_to_ptr.hbm [resolvable:$true] %s27_s14 }
   0x2   :  { %10 = vsyncpa [#allocation4], 0  ;;  %s1371_s15 = smov [#allocation5]   ;;  %s16_s19 = sshll.u32 %s1917_s0, 4  ;;  %s17_s19 = int_to_ptr.hbm [resolvable:$true] %s16_s19 }
   0x3   :  { %s29_s16 = sshll.u32 %s1371_s15, 4  ;;  %s1372_s20 = smov [#allocation2]   ;;  %s30_s16 = int_to_ptr.vmem [resolvable:$true] %s29_s16 }
   0x4   :  { %32 = dma.hbm_to_vmem [thread:$0]  %s28_s14, 128, %s30_s16, [#allocation6]  }
   0x5   :  { %s18_s21 = sshll.u32 %s1372_s20, 4  ;;  %s37_s24 = sshll.u32 %s1919_s2, 4  ;;  %s19_s21 = int_to_ptr.vmem [resolvable:$true] %s18_s21  ;;  %s38_s24 = int_to_ptr.hbm [resolvable:$true] %s37_s24 }
   0x6   :  { %21 = dma.hbm_to_vmem [thread:$0]  %s17_s19, 128, %s19_s21, [#allocation3]  }
   0x7   :  { %s1373_s1 = smov [#allocation7]   ;;  %s1374_s26 = smov 128  }
   0x8   :  { %s39_s25 = sshll.u32 %s1373_s1, 4  ;;  %s1375_s27 = smov 8   ;;  %s40_s25 = int_to_ptr.vmem [resolvable:$true] %s39_s25 }
   0x9   :  { %45 = dma.hbm_to_vmem [thread:$0]  %s38_s24, 256, %s40_s25, [#allocation6], %s1374_s26, %s1374_s26, %s1375_s27  }
   0xa   :  { %1365 = dma.done.wait [#allocation3], 128  }
   0xb   :  { %1366 = vsyncadd [#allocation3], 4294967168 }
   0xc   :  { %1367 = dma.done.wait [#allocation6], 384  }
   0xd   :  { %1368 = vsyncadd [#allocation6], 4294966912  ;;  %v60_v0 = vlaneseq  ;;  %v1418_v5 = vld [vmem:[#allocation2] ss:$0 sm:$0xff]  ;;  %v1420_v6 = vld [vmem:[#allocation5] ss:$0 sm:$0xff] }
   0xe   :  { %v1422_v7 = vld [vmem:[#allocation2 + $0x1] ss:$0 sm:$0xff]  ;;  %v1426_v8 = vld [vmem:[#allocation5 + $0x1] ss:$0 sm:$0xff]  ;;  %v1376_v10 = vmov 1.0   ;;  %v1535_v17 = vld [vmem:[#allocation7] sm:$0xff] }
   0xf   :  { %v1407_v1 = vshrl.u32 %v60_v0, 7  ;;  %v1519_v14 = vld [vmem:[#allocation2 + $0x3] ss:$0 sm:$0xff]  ;;  %v1527_v15 = vld [vmem:[#allocation5 + $0x3] ss:$0 sm:$0xff]  ;;  %v1595_v19 = vld [vmem:[#allocation7 + $0x8] sm:$0xff] }
  0x10   :  { %v1529_v16 = vld [vmem:[#allocation2 + $0x2] ss:$0 sm:$0xff]  ;;  %v1537_v18 = vld [vmem:[#allocation5 + $0x2] ss:$0 sm:$0xff]  ;;  %v1643_v20 = vld [vmem:[#allocation2 + $0x5] ss:$0 sm:$0xff] }
  0x11   :  { %v1410_v2 = vadd.s32 56, %v1407_v1  ;;  %v1413_v3 = vadd.s32 48, %v1407_v1  ;;  %v1416_v4 = vadd.s32 40, %v1407_v1  ;;  %v1431_v9 = vadd.s32 32, %v1407_v1  ;;  %v1651_v21 = vld [vmem:[#allocation5 + $0x5] ss:$0 sm:$0xff] }
  0x12   :  { %v1451_v11 = vadd.s32 24, %v1407_v1  ;;  %v1460_v12 = vadd.s32 16, %v1407_v1  ;;  %v1481_v13 = vadd.s32 8, %v1407_v1  ;;  %v1653_v22 = vld [vmem:[#allocation2 + $0x4] ss:$0 sm:$0xff]  ;;  %s1377_s0 = smov [#allocation8]  }
  0x13   :  { %vm78_vm0 = vcmp.eq.s32.totalorder %v1410_v2, %v1418_v5  ;;  %vm77_vm1 = vcmp.eq.s32.totalorder %v1413_v3, %v1418_v5  ;;  %vm104_vm2 = vcmp.eq.s32.totalorder %v1410_v2, %v1420_v6  ;;  %vm193_vm3 = vcmp.eq.s32.totalorder %v1410_v2, %v1422_v7  ;;  %v1659_v23 = vld [vmem:[#allocation5 + $0x4] ss:$0 sm:$0xff]  ;;  %v1763_v24 = vld [vmem:[#allocation2 + $0x7] ss:$0 sm:$0xff]  ;;  %v1771_v25 = vld [vmem:[#allocation5 + $0x7] ss:$0 sm:$0xff] }
  0x14   :  { %974 = vmatpush.msk.msra.mxu0 %vm78_vm0, %v1376_v10  ;;  %vm103_vm4 = vcmp.eq.s32.totalorder %v1413_v3, %v1420_v6  ;;  %vm192_vm5 = vcmp.eq.s32.totalorder %v1413_v3, %v1422_v7  ;;  %984 = vmatpush.msk.msra.mxu1 %vm104_vm2, %v1376_v10  ;;  %vm219_vm6 = vcmp.eq.s32.totalorder %v1410_v2, %v1426_v8  ;;  %v1773_v26 = vld [vmem:[#allocation2 + $0x6] ss:$0 sm:$0xff]  ;;  %v1779_v27 = vld [vmem:[#allocation5 + $0x6] ss:$0 sm:$0xff]  ;;  %s945_s2 = sshll.u32 %s1377_s0, 4  ;;  %s947_s30 = sshll.u32 %s1920_s3, 4  ;;  %s946_s2 = int_to_ptr.vmem [resolvable:$true] %s945_s2  ;;  %s948_s30 = int_to_ptr.hbm [resolvable:$true] %s947_s30 }
  0x15   :  { %1010 = vmatpush.msk.msra.mxu2 %vm193_vm3, %v1376_v10  ;;  %vm218_vm7 = vcmp.eq.s32.totalorder %v1413_v3, %v1426_v8  ;;  %vm76_vm8 = vcmp.eq.s32.totalorder %v1416_v4, %v1418_v5  ;;  %1020 = vmatpush.msk.msra.mxu3 %vm219_vm6, %v1376_v10  ;;  %vm102_vm9 = vcmp.eq.s32.totalorder %v1416_v4, %v1420_v6 }
  0x16   :  { %975 = vmatpush.msk.msra.mxu0 %vm77_vm1, %v1376_v10  ;;  %vm191_vm10 = vcmp.eq.s32.totalorder %v1416_v4, %v1422_v7  ;;  %985 = vmatpush.msk.msra.mxu1 %vm103_vm4, %v1376_v10  ;;  %vm217_vm11 = vcmp.eq.s32.totalorder %v1416_v4, %v1426_v8  ;;  %vm75_vm12 = vcmp.eq.s32.totalorder %v1431_v9, %v1418_v5 }
  0x17   :  { %1011 = vmatpush.msk.msra.mxu2 %vm192_vm5, %v1376_v10  ;;  %1021 = vmatpush.msk.msra.mxu3 %vm218_vm7, %v1376_v10  ;;  %vm101_vm13 = vcmp.eq.s32.totalorder %v1431_v9, %v1420_v6  ;;  %vm190_vm14 = vcmp.eq.s32.totalorder %v1431_v9, %v1422_v7  ;;  %vm216_vm15 = vcmp.eq.s32.totalorder %v1431_v9, %v1426_v8 }
  0x18   :  { %976 = vmatpush.msk.msra.mxu0 %vm76_vm8, %v1376_v10  ;;  %986 = vmatpush.msk.msra.mxu1 %vm102_vm9, %v1376_v10  ;;  %vm74_vm0 = vcmp.eq.s32.totalorder %v1451_v11, %v1418_v5  ;;  %vm100_vm1 = vcmp.eq.s32.totalorder %v1451_v11, %v1420_v6  ;;  %vm189_vm2 = vcmp.eq.s32.totalorder %v1451_v11, %v1422_v7 }
  0x19   :  { %1012 = vmatpush.msk.msra.mxu2 %vm191_vm10, %v1376_v10  ;;  %1022 = vmatpush.msk.msra.mxu3 %vm217_vm11, %v1376_v10  ;;  %vm215_vm3 = vcmp.eq.s32.totalorder %v1451_v11, %v1426_v8  ;;  %vm73_vm4 = vcmp.eq.s32.totalorder %v1460_v12, %v1418_v5  ;;  %vm99_vm5 = vcmp.eq.s32.totalorder %v1460_v12, %v1420_v6 }
  0x1a   :  { %977 = vmatpush.msk.msra.mxu0 %vm75_vm12, %v1376_v10  ;;  %987 = vmatpush.msk.msra.mxu1 %vm101_vm13, %v1376_v10  ;;  %vm188_vm6 = vcmp.eq.s32.totalorder %v1460_v12, %v1422_v7  ;;  %vm214_vm7 = vcmp.eq.s32.totalorder %v1460_v12, %v1426_v8  ;;  %vm72_vm8 = vcmp.eq.s32.totalorder %v1481_v13, %v1418_v5 }
  0x1b   :  { %1013 = vmatpush.msk.msra.mxu2 %vm190_vm14, %v1376_v10  ;;  %1023 = vmatpush.msk.msra.mxu3 %vm216_vm15, %v1376_v10  ;;  %vm98_vm9 = vcmp.eq.s32.totalorder %v1481_v13, %v1420_v6  ;;  %vm187_vm10 = vcmp.eq.s32.totalorder %v1481_v13, %v1422_v7  ;;  %vm213_vm11 = vcmp.eq.s32.totalorder %v1481_v13, %v1426_v8 }
  0x1c   :  { %978 = vmatpush.msk.msra.mxu0 %vm74_vm0, %v1376_v10  ;;  %988 = vmatpush.msk.msra.mxu1 %vm100_vm1, %v1376_v10  ;;  %vm71_vm12 = vcmp.eq.s32.totalorder %v1407_v1, %v1418_v5  ;;  %vm97_vm13 = vcmp.eq.s32.totalorder %v1407_v1, %v1420_v6  ;;  %vm186_vm14 = vcmp.eq.s32.totalorder %v1407_v1, %v1422_v7  ;;  %vm121_vm0 = vcmask 523264  }
  0x1d   :  { %1014 = vmatpush.msk.msra.mxu2 %vm189_vm2, %v1376_v10  ;;  %1024 = vmatpush.msk.msra.mxu3 %vm215_vm3, %v1376_v10  ;;  %vm212_vm15 = vcmp.eq.s32.totalorder %v1407_v1, %v1426_v8  ;;  %vm409_vm1 = vcmp.eq.s32.totalorder %v1410_v2, %v1519_v14  ;;  %vm435_vm2 = vcmp.eq.s32.totalorder %v1410_v2, %v1527_v15 }
  0x1e   :  { %979 = vmatpush.msk.msra.mxu0 %vm73_vm4, %v1376_v10  ;;  %989 = vmatpush.msk.msra.mxu1 %vm99_vm5, %v1376_v10  ;;  %vm301_vm3 = vcmp.eq.s32.totalorder %v1410_v2, %v1529_v16  ;;  %vm327_vm4 = vcmp.eq.s32.totalorder %v1410_v2, %v1537_v18  ;;  %vm408_vm5 = vcmp.eq.s32.totalorder %v1413_v3, %v1519_v14 }
  0x1f   :  { %1015 = vmatpush.msk.msra.mxu2 %vm188_vm6, %v1376_v10  ;;  %1025 = vmatpush.msk.msra.mxu3 %vm214_vm7, %v1376_v10  ;;  %vm434_vm6 = vcmp.eq.s32.totalorder %v1413_v3, %v1527_v15  ;;  %vm300_vm7 = vcmp.eq.s32.totalorder %v1413_v3, %v1529_v16 }
  0x20   :  { %980 = vmatpush.msk.msra.mxu0 %vm72_vm8, %v1376_v10  ;;  %990 = vmatpush.msk.msra.mxu1 %vm98_vm9, %v1376_v10  ;;  %vm326_vm8 = vcmp.eq.s32.totalorder %v1413_v3, %v1537_v18  ;;  %vm407_vm9 = vcmp.eq.s32.totalorder %v1416_v4, %v1519_v14 }
  0x21   :  { %1016 = vmatpush.msk.msra.mxu2 %vm187_vm10, %v1376_v10  ;;  %1026 = vmatpush.msk.msra.mxu3 %vm213_vm11, %v1376_v10  ;;  %vm433_vm10 = vcmp.eq.s32.totalorder %v1416_v4, %v1527_v15  ;;  %vm299_vm11 = vcmp.eq.s32.totalorder %v1416_v4, %v1529_v16 }
  0x22   :  { %981 = vmatpush.msk.msra.mxu0 %vm71_vm12, %v1376_v10  ;;  %991 = vmatpush.msk.msra.mxu1 %vm97_vm13, %v1376_v10  ;;  %vm325_vm12 = vcmp.eq.s32.totalorder %v1416_v4, %v1537_v18  ;;  %vm406_vm13 = vcmp.eq.s32.totalorder %v1431_v9, %v1519_v14 }
  0x23   :  { %1017 = vmatpush.msk.msra.mxu2 %vm186_vm14, %v1376_v10  ;;  %1027 = vmatpush.msk.msra.mxu3 %vm212_vm15, %v1376_v10  ;;  %vm432_vm14 = vcmp.eq.s32.totalorder %v1431_v9, %v1527_v15  ;;  %vm298_vm15 = vcmp.eq.s32.totalorder %v1431_v9, %v1529_v16 }
  0x24   :  { %982 = vmatmul.msk.f32.vlgmr.msra.gmra.mxu0 %vm121_vm0, %v1535_v17  ;;  %992 = vmatmul.msk.f32.vlgmr.msra.gmra.mxu1 %vm121_vm0, %v1535_v17 }
  0x25   :  { %1018 = vmatmul.msk.f32.vlgmr.msra.gmra.mxu2 %vm121_vm0, %v1535_v17  ;;  %1028 = vmatmul.msk.f32.vlgmr.msra.gmra.mxu3 %vm121_vm0, %v1535_v17 }
  0x26   :  { %1082 = vmatpush.msk.msrb.mxu2 %vm409_vm1, %v1376_v10  ;;  %1092 = vmatpush.msk.msrb.mxu3 %vm435_vm2, %v1376_v10  ;;  %vm324_vm1 = vcmp.eq.s32.totalorder %v1431_v9, %v1537_v18  ;;  %vm405_vm2 = vcmp.eq.s32.totalorder %v1451_v11, %v1519_v14 }
  0x27   :  { %1046 = vmatpush.msk.msrb.mxu0 %vm301_vm3, %v1376_v10  ;;  %1056 = vmatpush.msk.msrb.mxu1 %vm327_vm4, %v1376_v10  ;;  %vm431_vm3 = vcmp.eq.s32.totalorder %v1451_v11, %v1527_v15  ;;  %vm297_vm4 = vcmp.eq.s32.totalorder %v1451_v11, %v1529_v16 }
  0x28   :  { %1083 = vmatpush.msk.msrb.mxu2 %vm408_vm5, %v1376_v10  ;;  %1093 = vmatpush.msk.msrb.mxu3 %vm434_vm6, %v1376_v10  ;;  %vm323_vm5 = vcmp.eq.s32.totalorder %v1451_v11, %v1537_v18  ;;  %vm404_vm6 = vcmp.eq.s32.totalorder %v1460_v12, %v1519_v14 }
  0x29   :  { %1047 = vmatpush.msk.msrb.mxu0 %vm300_vm7, %v1376_v10  ;;  %1057 = vmatpush.msk.msrb.mxu1 %vm326_vm8, %v1376_v10  ;;  %vm430_vm7 = vcmp.eq.s32.totalorder %v1460_v12, %v1527_v15  ;;  %vm296_vm8 = vcmp.eq.s32.totalorder %v1460_v12, %v1529_v16 }
  0x2a   :  { %1084 = vmatpush.msk.msrb.mxu2 %vm407_vm9, %v1376_v10  ;;  %1094 = vmatpush.msk.msrb.mxu3 %vm433_vm10, %v1376_v10  ;;  %vm322_vm9 = vcmp.eq.s32.totalorder %v1460_v12, %v1537_v18  ;;  %vm403_vm10 = vcmp.eq.s32.totalorder %v1481_v13, %v1519_v14 }
  0x2b   :  { %1048 = vmatpush.msk.msrb.mxu0 %vm299_vm11, %v1376_v10  ;;  %1058 = vmatpush.msk.msrb.mxu1 %vm325_vm12, %v1376_v10  ;;  %vm429_vm11 = vcmp.eq.s32.totalorder %v1481_v13, %v1527_v15  ;;  %vm295_vm12 = vcmp.eq.s32.totalorder %v1481_v13, %v1529_v16 }
  0x2c   :  { %1085 = vmatpush.msk.msrb.mxu2 %vm406_vm13, %v1376_v10  ;;  %1095 = vmatpush.msk.msrb.mxu3 %vm432_vm14, %v1376_v10  ;;  %vm321_vm13 = vcmp.eq.s32.totalorder %v1481_v13, %v1537_v18  ;;  %vm402_vm14 = vcmp.eq.s32.totalorder %v1407_v1, %v1519_v14 }
  0x2d   :  { %1049 = vmatpush.msk.msrb.mxu0 %vm298_vm15, %v1376_v10  ;;  %1059 = vmatpush.msk.msrb.mxu1 %vm324_vm1, %v1376_v10  ;;  %vm428_vm15 = vcmp.eq.s32.totalorder %v1407_v1, %v1527_v15  ;;  %vm294_vm1 = vcmp.eq.s32.totalorder %v1407_v1, %v1529_v16 }
  0x2e   :  { %983 = vmatmul.msk.f32.gmra.mxu0 %vm121_vm0, %v1595_v19  ;;  %993 = vmatmul.msk.f32.gmra.mxu1 %vm121_vm0, %v1595_v19 }
  0x2f   :  { %1019 = vmatmul.msk.f32.gmra.mxu2 %vm121_vm0, %v1595_v19  ;;  %1029 = vmatmul.msk.f32.gmra.mxu3 %vm121_vm0, %v1595_v19 }
  0x30   :  { %1086 = vmatpush.msk.msrb.mxu2 %vm405_vm2, %v1376_v10  ;;  %1096 = vmatpush.msk.msrb.mxu3 %vm431_vm3, %v1376_v10  ;;  %vm320_vm2 = vcmp.eq.s32.totalorder %v1407_v1, %v1537_v18  ;;  %vm625_vm3 = vcmp.eq.s32.totalorder %v1410_v2, %v1643_v20 }
  0x31   :  { %1050 = vmatpush.msk.msrb.mxu0 %vm297_vm4, %v1376_v10  ;;  %1060 = vmatpush.msk.msrb.mxu1 %vm323_vm5, %v1376_v10  ;;  %vm651_vm4 = vcmp.eq.s32.totalorder %v1410_v2, %v1651_v21  ;;  %vm517_vm5 = vcmp.eq.s32.totalorder %v1410_v2, %v1653_v22 }
  0x32   :  { %1087 = vmatpush.msk.msrb.mxu2 %vm404_vm6, %v1376_v10  ;;  %1097 = vmatpush.msk.msrb.mxu3 %vm430_vm7, %v1376_v10  ;;  %vm543_vm6 = vcmp.eq.s32.totalorder %v1410_v2, %v1659_v23  ;;  %vm624_vm7 = vcmp.eq.s32.totalorder %v1413_v3, %v1643_v20 }
  0x33   :  { %1051 = vmatpush.msk.msrb.mxu0 %vm296_vm8, %v1376_v10  ;;  %1061 = vmatpush.msk.msrb.mxu1 %vm322_vm9, %v1376_v10  ;;  %vm650_vm8 = vcmp.eq.s32.totalorder %v1413_v3, %v1651_v21  ;;  %vm516_vm9 = vcmp.eq.s32.totalorder %v1413_v3, %v1653_v22 }
  0x34   :  { %1088 = vmatpush.msk.msrb.mxu2 %vm403_vm10, %v1376_v10  ;;  %1098 = vmatpush.msk.msrb.mxu3 %vm429_vm11, %v1376_v10  ;;  %vm542_vm10 = vcmp.eq.s32.totalorder %v1413_v3, %v1659_v23  ;;  %vm623_vm11 = vcmp.eq.s32.totalorder %v1416_v4, %v1643_v20 }
  0x35   :  { %1052 = vmatpush.msk.msrb.mxu0 %vm295_vm12, %v1376_v10  ;;  %1062 = vmatpush.msk.msrb.mxu1 %vm321_vm13, %v1376_v10  ;;  %vm649_vm12 = vcmp.eq.s32.totalorder %v1416_v4, %v1651_v21  ;;  %vm515_vm13 = vcmp.eq.s32.totalorder %v1416_v4, %v1653_v22 }
  0x36   :  { %1089 = vmatpush.msk.msrb.mxu2 %vm402_vm14, %v1376_v10  ;;  %1099 = vmatpush.msk.msrb.mxu3 %vm428_vm15, %v1376_v10  ;;  %vm541_vm14 = vcmp.eq.s32.totalorder %v1416_v4, %v1659_v23  ;;  %vm622_vm15 = vcmp.eq.s32.totalorder %v1431_v9, %v1643_v20 }
  0x37   :  { %1053 = vmatpush.msk.msrb.mxu0 %vm294_vm1, %v1376_v10  ;;  %1063 = vmatpush.msk.msrb.mxu1 %vm320_vm2, %v1376_v10  ;;  %vm648_vm1 = vcmp.eq.s32.totalorder %v1431_v9, %v1651_v21  ;;  %vm514_vm2 = vcmp.eq.s32.totalorder %v1431_v9, %v1653_v22 }
  0x38   :  { %1054 = vmatmul.msk.f32.vlgmr.msrb.gmra.mxu0 %vm121_vm0, %v1535_v17  ;;  %1064 = vmatmul.msk.f32.vlgmr.msrb.gmra.mxu1 %vm121_vm0, %v1535_v17 }
  0x39   :  { %1090 = vmatmul.msk.f32.vlgmr.msrb.gmra.mxu2 %vm121_vm0, %v1535_v17  ;;  %1100 = vmatmul.msk.f32.vlgmr.msrb.gmra.mxu3 %vm121_vm0, %v1535_v17 }
  0x3a   :  { %1154 = vmatpush.msk.msra.mxu2 %vm625_vm3, %v1376_v10  ;;  %1164 = vmatpush.msk.msra.mxu3 %vm651_vm4, %v1376_v10  ;;  %vm540_vm3 = vcmp.eq.s32.totalorder %v1431_v9, %v1659_v23  ;;  %vm621_vm4 = vcmp.eq.s32.totalorder %v1451_v11, %v1643_v20 }
  0x3b   :  { %1118 = vmatpush.msk.msra.mxu0 %vm517_vm5, %v1376_v10  ;;  %1128 = vmatpush.msk.msra.mxu1 %vm543_vm6, %v1376_v10  ;;  %vm647_vm5 = vcmp.eq.s32.totalorder %v1451_v11, %v1651_v21  ;;  %vm513_vm6 = vcmp.eq.s32.totalorder %v1451_v11, %v1653_v22 }
  0x3c   :  { %1155 = vmatpush.msk.msra.mxu2 %vm624_vm7, %v1376_v10  ;;  %1165 = vmatpush.msk.msra.mxu3 %vm650_vm8, %v1376_v10  ;;  %vm539_vm7 = vcmp.eq.s32.totalorder %v1451_v11, %v1659_v23  ;;  %vm620_vm8 = vcmp.eq.s32.totalorder %v1460_v12, %v1643_v20 }
  0x3d   :  { %1119 = vmatpush.msk.msra.mxu0 %vm516_vm9, %v1376_v10  ;;  %1129 = vmatpush.msk.msra.mxu1 %vm542_vm10, %v1376_v10  ;;  %vm646_vm9 = vcmp.eq.s32.totalorder %v1460_v12, %v1651_v21  ;;  %vm512_vm10 = vcmp.eq.s32.totalorder %v1460_v12, %v1653_v22 }
  0x3e   :  { %1156 = vmatpush.msk.msra.mxu2 %vm623_vm11, %v1376_v10  ;;  %1166 = vmatpush.msk.msra.mxu3 %vm649_vm12, %v1376_v10  ;;  %vm538_vm11 = vcmp.eq.s32.totalorder %v1460_v12, %v1659_v23  ;;  %vm619_vm12 = vcmp.eq.s32.totalorder %v1481_v13, %v1643_v20 }
  0x3f   :  { %1120 = vmatpush.msk.msra.mxu0 %vm515_vm13, %v1376_v10  ;;  %1130 = vmatpush.msk.msra.mxu1 %vm541_vm14, %v1376_v10  ;;  %vm645_vm13 = vcmp.eq.s32.totalorder %v1481_v13, %v1651_v21  ;;  %vm511_vm14 = vcmp.eq.s32.totalorder %v1481_v13, %v1653_v22 }
  0x40   :  { %1157 = vmatpush.msk.msra.mxu2 %vm622_vm15, %v1376_v10  ;;  %1167 = vmatpush.msk.msra.mxu3 %vm648_vm1, %v1376_v10  ;;  %vm537_vm15 = vcmp.eq.s32.totalorder %v1481_v13, %v1659_v23  ;;  %vm618_vm1 = vcmp.eq.s32.totalorder %v1407_v1, %v1643_v20 }
  0x41   :  { %1121 = vmatpush.msk.msra.mxu0 %vm514_vm2, %v1376_v10  ;;  %1131 = vmatpush.msk.msra.mxu1 %vm540_vm3, %v1376_v10  ;;  %vm644_vm2 = vcmp.eq.s32.totalorder %v1407_v1, %v1651_v21  ;;  %vm510_vm3 = vcmp.eq.s32.totalorder %v1407_v1, %v1653_v22 }
  0x42   :  { %1055 = vmatmul.msk.f32.gmra.mxu0 %vm121_vm0, %v1595_v19  ;;  %1065 = vmatmul.msk.f32.gmra.mxu1 %vm121_vm0, %v1595_v19 }
  0x43   :  { %1091 = vmatmul.msk.f32.gmra.mxu2 %vm121_vm0, %v1595_v19  ;;  %1101 = vmatmul.msk.f32.gmra.mxu3 %vm121_vm0, %v1595_v19 }
  0x44   :  { %1158 = vmatpush.msk.msra.mxu2 %vm621_vm4, %v1376_v10  ;;  %1168 = vmatpush.msk.msra.mxu3 %vm647_vm5, %v1376_v10  ;;  %vm536_vm4 = vcmp.eq.s32.totalorder %v1407_v1, %v1659_v23  ;;  %vm841_vm5 = vcmp.eq.s32.totalorder %v1410_v2, %v1763_v24 }
  0x45   :  { %1122 = vmatpush.msk.msra.mxu0 %vm513_vm6, %v1376_v10  ;;  %1132 = vmatpush.msk.msra.mxu1 %vm539_vm7, %v1376_v10  ;;  %vm867_vm6 = vcmp.eq.s32.totalorder %v1410_v2, %v1771_v25  ;;  %vm733_vm7 = vcmp.eq.s32.totalorder %v1410_v2, %v1773_v26 }
  0x46   :  { %1159 = vmatpush.msk.msra.mxu2 %vm620_vm8, %v1376_v10  ;;  %1169 = vmatpush.msk.msra.mxu3 %vm646_vm9, %v1376_v10  ;;  %vm759_vm8 = vcmp.eq.s32.totalorder %v1410_v2, %v1779_v27  ;;  %vm840_vm9 = vcmp.eq.s32.totalorder %v1413_v3, %v1763_v24 }
  0x47   :  { %1123 = vmatpush.msk.msra.mxu0 %vm512_vm10, %v1376_v10  ;;  %1133 = vmatpush.msk.msra.mxu1 %vm538_vm11, %v1376_v10  ;;  %vm866_vm10 = vcmp.eq.s32.totalorder %v1413_v3, %v1771_v25  ;;  %vm732_vm11 = vcmp.eq.s32.totalorder %v1413_v3, %v1773_v26 }
  0x48   :  { %1160 = vmatpush.msk.msra.mxu2 %vm619_vm12, %v1376_v10  ;;  %1170 = vmatpush.msk.msra.mxu3 %vm645_vm13, %v1376_v10  ;;  %vm758_vm12 = vcmp.eq.s32.totalorder %v1413_v3, %v1779_v27  ;;  %vm839_vm13 = vcmp.eq.s32.totalorder %v1416_v4, %v1763_v24 }
  0x49   :  { %1124 = vmatpush.msk.msra.mxu0 %vm511_vm14, %v1376_v10  ;;  %1134 = vmatpush.msk.msra.mxu1 %vm537_vm15, %v1376_v10  ;;  %vm865_vm14 = vcmp.eq.s32.totalorder %v1416_v4, %v1771_v25  ;;  %vm731_vm15 = vcmp.eq.s32.totalorder %v1416_v4, %v1773_v26 }
  0x4a   :  { %1161 = vmatpush.msk.msra.mxu2 %vm618_vm1, %v1376_v10  ;;  %1171 = vmatpush.msk.msra.mxu3 %vm644_vm2, %v1376_v10  ;;  %vm757_vm1 = vcmp.eq.s32.totalorder %v1416_v4, %v1779_v27  ;;  %vm838_vm2 = vcmp.eq.s32.totalorder %v1431_v9, %v1763_v24 }
  0x4b   :  { %1125 = vmatpush.msk.msra.mxu0 %vm510_vm3, %v1376_v10  ;;  %1135 = vmatpush.msk.msra.mxu1 %vm536_vm4, %v1376_v10  ;;  %vm864_vm3 = vcmp.eq.s32.totalorder %v1431_v9, %v1771_v25  ;;  %vm730_vm4 = vcmp.eq.s32.totalorder %v1431_v9, %v1773_v26 }
  0x4c   :  { %1126 = vmatmul.msk.f32.vlgmr.msra.gmra.mxu0 %vm121_vm0, %v1535_v17  ;;  %1136 = vmatmul.msk.f32.vlgmr.msra.gmra.mxu1 %vm121_vm0, %v1535_v17 }
  0x4d   :  { %1162 = vmatmul.msk.f32.vlgmr.msra.gmra.mxu2 %vm121_vm0, %v1535_v17  ;;  %1172 = vmatmul.msk.f32.vlgmr.msra.gmra.mxu3 %vm121_vm0, %v1535_v17 }
  0x4e   :  { %1226 = vmatpush.msk.msrb.mxu2 %vm841_vm5, %v1376_v10  ;;  %1236 = vmatpush.msk.msrb.mxu3 %vm867_vm6, %v1376_v10  ;;  %vm756_vm5 = vcmp.eq.s32.totalorder %v1431_v9, %v1779_v27  ;;  %vm837_vm6 = vcmp.eq.s32.totalorder %v1451_v11, %v1763_v24 }
  0x4f   :  { %1190 = vmatpush.msk.msrb.mxu0 %vm733_vm7, %v1376_v10  ;;  %1200 = vmatpush.msk.msrb.mxu1 %vm759_vm8, %v1376_v10  ;;  %vm863_vm7 = vcmp.eq.s32.totalorder %v1451_v11, %v1771_v25  ;;  %vm729_vm8 = vcmp.eq.s32.totalorder %v1451_v11, %v1773_v26 }
  0x50   :  { %1227 = vmatpush.msk.msrb.mxu2 %vm840_vm9, %v1376_v10  ;;  %1237 = vmatpush.msk.msrb.mxu3 %vm866_vm10, %v1376_v10  ;;  %vm755_vm9 = vcmp.eq.s32.totalorder %v1451_v11, %v1779_v27  ;;  %vm836_vm10 = vcmp.eq.s32.totalorder %v1460_v12, %v1763_v24 }
  0x51   :  { %1191 = vmatpush.msk.msrb.mxu0 %vm732_vm11, %v1376_v10  ;;  %1201 = vmatpush.msk.msrb.mxu1 %vm758_vm12, %v1376_v10  ;;  %vm862_vm11 = vcmp.eq.s32.totalorder %v1460_v12, %v1771_v25  ;;  %vm728_vm12 = vcmp.eq.s32.totalorder %v1460_v12, %v1773_v26 }
  0x52   :  { %1228 = vmatpush.msk.msrb.mxu2 %vm839_vm13, %v1376_v10  ;;  %1238 = vmatpush.msk.msrb.mxu3 %vm865_vm14, %v1376_v10  ;;  %vm754_vm13 = vcmp.eq.s32.totalorder %v1460_v12, %v1779_v27  ;;  %vm835_vm14 = vcmp.eq.s32.totalorder %v1481_v13, %v1763_v24 }
  0x53   :  { %1192 = vmatpush.msk.msrb.mxu0 %vm731_vm15, %v1376_v10  ;;  %1202 = vmatpush.msk.msrb.mxu1 %vm757_vm1, %v1376_v10  ;;  %vm861_vm15 = vcmp.eq.s32.totalorder %v1481_v13, %v1771_v25  ;;  %vm727_vm1 = vcmp.eq.s32.totalorder %v1481_v13, %v1773_v26 }
  0x54   :  { %1229 = vmatpush.msk.msrb.mxu2 %vm838_vm2, %v1376_v10  ;;  %1239 = vmatpush.msk.msrb.mxu3 %vm864_vm3, %v1376_v10  ;;  %vm753_vm2 = vcmp.eq.s32.totalorder %v1481_v13, %v1779_v27  ;;  %vm834_vm3 = vcmp.eq.s32.totalorder %v1407_v1, %v1763_v24 }
  0x55   :  { %1193 = vmatpush.msk.msrb.mxu0 %vm730_vm4, %v1376_v10  ;;  %1203 = vmatpush.msk.msrb.mxu1 %vm756_vm5, %v1376_v10  ;;  %vm860_vm4 = vcmp.eq.s32.totalorder %v1407_v1, %v1771_v25  ;;  %vm726_vm5 = vcmp.eq.s32.totalorder %v1407_v1, %v1773_v26 }
  0x56   :  { %1127 = vmatmul.msk.f32.gmra.mxu0 %vm121_vm0, %v1595_v19  ;;  %1137 = vmatmul.msk.f32.gmra.mxu1 %vm121_vm0, %v1595_v19 }
  0x57   :  { %1163 = vmatmul.msk.f32.gmra.mxu2 %vm121_vm0, %v1595_v19  ;;  %1173 = vmatmul.msk.f32.gmra.mxu3 %vm121_vm0, %v1595_v19 }
  0x58   :  { %1230 = vmatpush.msk.msrb.mxu2 %vm837_vm6, %v1376_v10  ;;  %1240 = vmatpush.msk.msrb.mxu3 %vm863_vm7, %v1376_v10  ;;  %vm752_vm6 = vcmp.eq.s32.totalorder %v1407_v1, %v1779_v27 }
  0x59   :  { %1194 = vmatpush.msk.msrb.mxu0 %vm729_vm8, %v1376_v10  ;;  %1204 = vmatpush.msk.msrb.mxu1 %vm755_vm9, %v1376_v10 }
  0x5a   :  { %1231 = vmatpush.msk.msrb.mxu2 %vm836_vm10, %v1376_v10  ;;  %1241 = vmatpush.msk.msrb.mxu3 %vm862_vm11, %v1376_v10 }
  0x5b   :  { %1195 = vmatpush.msk.msrb.mxu0 %vm728_vm12, %v1376_v10  ;;  %1205 = vmatpush.msk.msrb.mxu1 %vm754_vm13, %v1376_v10 }
  0x5c   :  { %1232 = vmatpush.msk.msrb.mxu2 %vm835_vm14, %v1376_v10  ;;  %1242 = vmatpush.msk.msrb.mxu3 %vm861_vm15, %v1376_v10 }
  0x5d   :  { %1196 = vmatpush.msk.msrb.mxu0 %vm727_vm1, %v1376_v10  ;;  %1206 = vmatpush.msk.msrb.mxu1 %vm753_vm2, %v1376_v10 }
  0x5e   :  { %1233 = vmatpush.msk.msrb.mxu2 %vm834_vm3, %v1376_v10  ;;  %1243 = vmatpush.msk.msrb.mxu3 %vm860_vm4, %v1376_v10 }
  0x5f   :  { %1197 = vmatpush.msk.msrb.mxu0 %vm726_vm5, %v1376_v10  ;;  %1207 = vmatpush.msk.msrb.mxu1 %vm752_vm6, %v1376_v10 }
  0x60   :  { %1198 = vmatmul.msk.f32.vlgmr.msrb.gmra.mxu0 %vm121_vm0, %v1535_v17  ;;  %1208 = vmatmul.msk.f32.vlgmr.msrb.gmra.mxu1 %vm121_vm0, %v1535_v17 }
  0x61   :  { %1234 = vmatmul.msk.f32.vlgmr.msrb.gmra.mxu2 %vm121_vm0, %v1535_v17  ;;  %1244 = vmatmul.msk.f32.vlgmr.msrb.gmra.mxu3 %vm121_vm0, %v1535_v17 }
  0x68   :  { %1199 = vmatmul.msk.f32.gmra.mxu0 %vm121_vm0, %v1595_v19  ;;  %1209 = vmatmul.msk.f32.gmra.mxu1 %vm121_vm0, %v1595_v19 }
  0x69   :  { %1235 = vmatmul.msk.f32.gmra.mxu2 %vm121_vm0, %v1595_v19  ;;  %1245 = vmatmul.msk.f32.gmra.mxu3 %vm121_vm0, %v1595_v19 }
  0xa1   :  { %v145_v28 = vpop.f32.mrf.mxu0  ;;  %v168_v29 = vpop.f32.mrf.mxu1 }
  0xa2   :  { %v174_v34 = vmul.f32 %v168_v29, %v145_v28 }
  0xa8   :  { %v253_v30 = vpop.f32.mrf.mxu2  ;;  %v276_v31 = vpop.f32.mrf.mxu3 }
  0xa9   :  { %v282_v41 = vmul.f32 %v276_v31, %v253_v30 }
  0xab   :  { %v148_v32 = vpop.f32.mrf.mxu0  ;;  %v171_v33 = vpop.f32.mrf.mxu1 }
  0xac   :  { %v175_v35 = vmul.f32 %v171_v33, %v148_v32 }
  0xae   :  { %v176_v36 = vadd.f32 %v175_v35, %v174_v34 }
  0xb0   :  { %v177_v37 = vrot.slane %v176_v36, 4 }
  0xb2   :  { %v256_v38 = vpop.f32.mrf.mxu2  ;;  %v178_v39 = vadd.f32 %v177_v37, %v176_v36  ;;  %v279_v40 = vpop.f32.mrf.mxu3 }
  0xb3   :  { %v283_v42 = vmul.f32 %v279_v40, %v256_v38 }
  0xb4   :  { %v179_v43 = vrot.slane %v178_v39, 2 }
  0xb5   :  { %v361_v44 = vpop.f32.mrf.mxu0  ;;  %v284_v45 = vadd.f32 %v283_v42, %v282_v41  ;;  %v384_v46 = vpop.f32.mrf.mxu1 }
  0xb6   :  { %v180_v47 = vadd.f32 %v179_v43, %v178_v39  ;;  %v390_v59 = vmul.f32 %v384_v46, %v361_v44 }
  0xb7   :  { %v285_v48 = vrot.slane %v284_v45, 4 }
  0xb8   :  { %v181_v49 = vrot.slane %v180_v47, 1 }
  0xb9   :  { %v286_v50 = vadd.f32 %v285_v48, %v284_v45 }
  0xba   :  { %v182_v51 = vadd.f32 %v181_v49, %v180_v47 }
  0xbb   :  { %v287_v52 = vrot.slane %v286_v50, 2 }
  0xbc   :  { %v469_v53 = vpop.f32.mrf.mxu2  ;;  %183 = vst [vmem:[#allocation8] sm:$0x1] %v182_v51  ;;  %v492_v54 = vpop.f32.mrf.mxu3 }
  0xbd   :  { %v288_v55 = vadd.f32 %v287_v52, %v286_v50  ;;  %v498_v3 = vmul.f32 %v492_v54, %v469_v53 }
  0xbf   :  { %v364_v56 = vpop.f32.mrf.mxu0  ;;  %v289_v57 = vrot.slane %v288_v55, 1  ;;  %v387_v58 = vpop.f32.mrf.mxu1 }
  0xc0   :  { %v391_v60 = vmul.f32 %v387_v58, %v364_v56 }
  0xc1   :  { %v290_v61 = vadd.f32 %v289_v57, %v288_v55 }
  0xc2   :  { %v392_v62 = vadd.f32 %v391_v60, %v390_v59 }
  0xc3   :  { %291 = vst [vmem:[#allocation8 + $0x1] sm:$0x1] %v290_v61 }
  0xc4   :  { %v393_v63 = vrot.slane %v392_v62, 4 }
  0xc6   :  { %v472_v0 = vpop.f32.mrf.mxu2  ;;  %v394_v1 = vadd.f32 %v393_v63, %v392_v62  ;;  %v495_v2 = vpop.f32.mrf.mxu3 }
  0xc7   :  { %v499_v4 = vmul.f32 %v495_v2, %v472_v0 }
  0xc8   :  { %v395_v5 = vrot.slane %v394_v1, 2 }
  0xc9   :  { %v577_v6 = vpop.f32.mrf.mxu0  ;;  %v500_v7 = vadd.f32 %v499_v4, %v498_v3  ;;  %v600_v8 = vpop.f32.mrf.mxu1 }
  0xca   :  { %v396_v9 = vadd.f32 %v395_v5, %v394_v1  ;;  %v606_v21 = vmul.f32 %v600_v8, %v577_v6 }
  0xcb   :  { %v501_v10 = vrot.slane %v500_v7, 4 }
  0xcc   :  { %v397_v11 = vrot.slane %v396_v9, 1 }
  0xcd   :  { %v502_v12 = vadd.f32 %v501_v10, %v500_v7 }
  0xce   :  { %v398_v13 = vadd.f32 %v397_v11, %v396_v9 }
  0xcf   :  { %v503_v14 = vrot.slane %v502_v12, 2 }
  0xd0   :  { %v685_v15 = vpop.f32.mrf.mxu2  ;;  %399 = vst [vmem:[#allocation8 + $0x2] sm:$0x1] %v398_v13  ;;  %v708_v16 = vpop.f32.mrf.mxu3 }
  0xd1   :  { %v504_v17 = vadd.f32 %v503_v14, %v502_v12  ;;  %v714_v29 = vmul.f32 %v708_v16, %v685_v15 }
  0xd3   :  { %v580_v18 = vpop.f32.mrf.mxu0  ;;  %v505_v19 = vrot.slane %v504_v17, 1  ;;  %v603_v20 = vpop.f32.mrf.mxu1 }
  0xd4   :  { %v607_v22 = vmul.f32 %v603_v20, %v580_v18 }
  0xd5   :  { %v506_v23 = vadd.f32 %v505_v19, %v504_v17 }
  0xd6   :  { %v608_v24 = vadd.f32 %v607_v22, %v606_v21 }
  0xd7   :  { %507 = vst [vmem:[#allocation8 + $0x3] sm:$0x1] %v506_v23 }
  0xd8   :  { %v609_v25 = vrot.slane %v608_v24, 4 }
  0xda   :  { %v688_v26 = vpop.f32.mrf.mxu2  ;;  %v610_v27 = vadd.f32 %v609_v25, %v608_v24  ;;  %v711_v28 = vpop.f32.mrf.mxu3 }
  0xdb   :  { %v715_v30 = vmul.f32 %v711_v28, %v688_v26 }
  0xdc   :  { %v611_v31 = vrot.slane %v610_v27, 2 }
  0xdd   :  { %v793_v32 = vpop.f32.mrf.mxu0  ;;  %v716_v33 = vadd.f32 %v715_v30, %v714_v29  ;;  %v816_v34 = vpop.f32.mrf.mxu1 }
  0xde   :  { %v612_v35 = vadd.f32 %v611_v31, %v610_v27  ;;  %v822_v46 = vmul.f32 %v816_v34, %v793_v32 }
  0xdf   :  { %v717_v36 = vrot.slane %v716_v33, 4 }
  0xe0   :  { %v613_v37 = vrot.slane %v612_v35, 1 }
  0xe1   :  { %v718_v38 = vadd.f32 %v717_v36, %v716_v33 }
  0xe2   :  { %v614_v39 = vadd.f32 %v613_v37, %v612_v35 }
  0xe3   :  { %v719_v40 = vrot.slane %v718_v38, 2 }
  0xe4   :  { %v901_v41 = vpop.f32.mrf.mxu2  ;;  %615 = vst [vmem:[#allocation8 + $0x4] sm:$0x1] %v614_v39  ;;  %v924_v42 = vpop.f32.mrf.mxu3 }
  0xe5   :  { %v796_v43 = vpop.f32.mrf.mxu0  ;;  %v720_v44 = vadd.f32 %v719_v40, %v718_v38  ;;  %v819_v45 = vpop.f32.mrf.mxu1  ;;  %v930_v55 = vmul.f32 %v924_v42, %v901_v41 }
  0xe6   :  { %v823_v47 = vmul.f32 %v819_v45, %v796_v43 }
  0xe7   :  { %v721_v48 = vrot.slane %v720_v44, 1 }
  0xe8   :  { %v824_v49 = vadd.f32 %v823_v47, %v822_v46 }
  0xe9   :  { %v722_v50 = vadd.f32 %v721_v48, %v720_v44 }
  0xea   :  { %v825_v51 = vrot.slane %v824_v49, 4 }
  0xeb   :  { %723 = vst [vmem:[#allocation8 + $0x5] sm:$0x1] %v722_v50 }
  0xec   :  { %v904_v52 = vpop.f32.mrf.mxu2  ;;  %v826_v53 = vadd.f32 %v825_v51, %v824_v49  ;;  %v927_v54 = vpop.f32.mrf.mxu3 }
  0xed   :  { %v931_v56 = vmul.f32 %v927_v54, %v904_v52 }
  0xee   :  { %v827_v57 = vrot.slane %v826_v53, 2 }
  0xef   :  { %v932_v58 = vadd.f32 %v931_v56, %v930_v55 }
  0xf0   :  { %v828_v59 = vadd.f32 %v827_v57, %v826_v53 }
  0xf1   :  { %v933_v60 = vrot.slane %v932_v58, 4 }
  0xf2   :  { %v829_v61 = vrot.slane %v828_v59, 1 }
  0xf3   :  { %v934_v62 = vadd.f32 %v933_v60, %v932_v58 }
  0xf4   :  { %v830_v63 = vadd.f32 %v829_v61, %v828_v59 }
  0xf5   :  { %v935_v0 = vrot.slane %v934_v62, 2 }
  0xf6   :  { %831 = vst [vmem:[#allocation8 + $0x6] sm:$0x1] %v830_v63 }
  0xf7   :  { %v936_v1 = vadd.f32 %v935_v0, %v934_v62 }
  0xf9   :  { %v937_v2 = vrot.slane %v936_v1, 1 }
  0xfb   :  { %v938_v3 = vadd.f32 %v937_v2, %v936_v1 }
  0xfd   :  { %939 = vst [vmem:[#allocation8 + $0x7] sm:$0x1] %v938_v3 }
  0xfe   :  { %950 = dma.vmem_to_hbm [thread:$0]  %s946_s2, 128, %s948_s30, [#allocation4]  }
  0xff   :  { %1369 = dma.done.wait [#allocation4], 128  }
 0x100   :  { %1370 = vsyncadd [#allocation4], 4294967168 }
 0x101   :  { %955 = vsyncpa [#allocation3], 1 }
 0x102   :  { %956 = vsyncpa [#allocation6], 1 }
 0x103   :  { %957 = vsyncpa [#allocation4], 1 }

</bundles_post_ra>
